<compile_context>
chip_gen: v7x
topology: tpu7x:2x2x1
jax: 0.10.0
libtpu: 0.0.40
codegen_flags: <defaults>
</compile_context>

<pallas_src>
import functools

import jax
import jax.numpy as jnp
from jax.experimental import pallas as pl
from jax.experimental.pallas import tpu as pltpu


def rle_head_kernel(x_ref, w_ref, b_ref, out_ref, *, dim_d, num_joints):
    """One grid step: (block_n, C) features -> (block_n, SLAB) output slab.

    Slab lane layout: [0:D) coord, [D:2D) sigma, [2D:2D+K) scores, rest zeros.
    """
    x = x_ref[...]                                                    # (bn, C) f32

    # Single fused MXU call: packed weight covers fc_coord and fc_sigma.
    y = jnp.dot(x, w_ref[...], preferred_element_type=jnp.float32)    # (bn, SLAB)

    # rsqrt (EUP slot) instead of sqrt + divide (VPU).
    inv_norm = jax.lax.rsqrt(jnp.sum(x * x, axis=1, keepdims=True))   # (bn, 1)

    slab = y.shape[-1]
    lane = jax.lax.broadcasted_iota(jnp.int32, (1, slab), 1)          # (1, SLAB)
    coord_mask = lane < dim_d
    sigma_mask = (lane >= dim_d) & (lane < 2 * dim_d)

    # Coord lanes scaled by 1/||x||, sigma lanes by 1; bias is pre-packed.
    scale = jnp.where(coord_mask, inv_norm, jnp.float32(1.0))         # (bn, SLAB)
    z = y * scale + b_ref[...]                                        # (bn, SLAB)

    sig = jax.nn.sigmoid(z) + jnp.float32(1e-9)                       # (bn, SLAB)

    # Per-joint triple-average pool built in-register from iota (no HBM
    # operand, no scratch init hazard): pool[D + 3k + m, 2D + k] = 1/3.
    row = jax.lax.broadcasted_iota(jnp.int32, (slab, slab), 0)
    col = jax.lax.broadcasted_iota(jnp.int32, (slab, slab), 1)
    diff = (row - dim_d) - 3 * (col - 2 * dim_d)
    in_pool = ((row >= dim_d) & (row < 2 * dim_d)
               & (col >= 2 * dim_d) & (col < 2 * dim_d + num_joints)
               & (diff >= 0) & (diff < 3))
    pool = jnp.where(in_pool, jnp.float32(1.0 / 3.0), jnp.float32(0.0))

    # scores = mean(1 - sigma) over each joint triple, landing in lanes
    # [2D, 2D+K); rows outside the sigma lanes / cols outside the score
    # lanes are zero.
    scores = jnp.dot(1.0 - sig, pool, preferred_element_type=jnp.float32)

    out_ref[...] = jnp.where(coord_mask, z,
                             jnp.where(sigma_mask, sig, scores))


def _choose_tiling(n):
    """Return (block_n, padded_n).

    Largest power-of-two tile <= min(1024, n // 2) (floor 8, the f32 sublane
    minimum): big tiles amortize the ~0.35us per-grid-step overhead, and the
    n//2 cap guarantees >= 2 grid blocks once the batch allows it so v7x's
    two TensorCores both get work via the "parallel" axis.  N is padded up to
    a multiple of the tile (padding rows are sliced off by the wrapper).
    """
    target = max(8, min(1024, n // 2))
    bn = 8
    while bn * 2 <= target:
        bn *= 2
    padded = pl.cdiv(n, bn) * bn
    return bn, padded


def pack_rle_head_params(w_coord, b_coord, w_sigma, b_sigma, num_joints):
    """One-time parameter prep (call at init, NOT per forward call).

    w_*: (C, D) pre-transposed Linear weights; b_*: (1, D); D = num_joints*3.
    Returns a lane-dense packed weight (C, SLAB) and bias (1, SLAB) with
    columns [0:D)=coord, [D:2D)=sigma, rest zero.
    """
    C, D = w_coord.shape
    slab = max(128, pl.cdiv(2 * D + num_joints, 128) * 128)   # 2*51+17=119 -> 128
    w_packed = jnp.zeros((C, slab), jnp.float32)
    w_packed = w_packed.at[:, :D].set(w_coord.astype(jnp.float32))
    w_packed = w_packed.at[:, D:2 * D].set(w_sigma.astype(jnp.float32))
    b_packed = jnp.zeros((1, slab), jnp.float32)
    b_packed = b_packed.at[:, :D].set(b_coord.astype(jnp.float32))
    b_packed = b_packed.at[:, D:2 * D].set(b_sigma.astype(jnp.float32))
    return w_packed, b_packed


@functools.partial(jax.jit, static_argnames=("num_joints",))
def rle_head_forward_packed(x, w_packed, b_packed, num_joints):
    """Forward with pre-packed params.  x: (N, C) f32."""
    N, C = x.shape
    K = num_joints
    D = K * 3
    SLAB = w_packed.shape[1]

    block_n, n_pad = _choose_tiling(N)
    x_in = jnp.pad(x, ((0, n_pad - N), (0, 0))) if n_pad != N else x
    grid = (n_pad // block_n,)

    kernel = functools.partial(rle_head_kernel, dim_d=D, num_joints=K)

    cost = pl.CostEstimate(
        flops=2 * n_pad * C * SLAB + 2 * n_pad * SLAB * SLAB + 10 * n_pad * SLAB,
        transcendentals=n_pad * SLAB + n_pad,
        bytes_accessed=4 * (n_pad * C + C * SLAB + SLAB + n_pad * SLAB),
    )

    # Double-buffered operand footprint (f32) + headroom, capped for v7x's
    # 64 MiB physical VMEM.  Matters only once C is a real backbone width.
    operand_vmem = 8 * (block_n * C + C * SLAB + SLAB + block_n * SLAB)
    vmem_limit = int(min(64 * 1024 * 1024,
                         max(16 * 1024 * 1024, 2 * operand_vmem + (2 << 20))))

    slab_out = pl.pallas_call(
        kernel,
        out_shape=jax.ShapeDtypeStruct((n_pad, SLAB), jnp.float32),
        grid=grid,
        in_specs=[
            pl.BlockSpec((block_n, C), lambda i: (i, 0)),
            pl.BlockSpec((C, SLAB), lambda i: (0, 0)),
            pl.BlockSpec((1, SLAB), lambda i: (0, 0)),
        ],
        out_specs=pl.BlockSpec((block_n, SLAB), lambda i: (i, 0)),
        compiler_params=pltpu.CompilerParams(
            dimension_semantics=("parallel",),
            vmem_limit_bytes=vmem_limit,
        ),
        cost_estimate=cost,
    )(x_in, w_packed, b_packed)

    # Consumers that can read the (N,128) slab directly should do so; these
    # slices are kept for API parity with the PyTorch head.
    pred_jts = slab_out[:N, :D].reshape(N, K, 3)
    sigma = slab_out[:N, D:2 * D].reshape(N, K, 3)
    maxvals = slab_out[:N, 2 * D:2 * D + K].reshape(N, K, 1)
    return pred_jts, sigma, maxvals


def rle_regression_head_forward(x, w_coord, b_coord, w_sigma, b_sigma, num_joints):
    """Convenience wrapper: packs params then runs the kernel (prefer packing
    once at init via pack_rle_head_params and calling rle_head_forward_packed)."""
    w_packed, b_packed = pack_rle_head_params(
        w_coord, b_coord, w_sigma, b_sigma, num_joints)
    return rle_head_forward_packed(x, w_packed, b_packed, num_joints)


def ref_forward(x, w_coord, b_coord, w_sigma, b_sigma, num_joints):
    N = x.shape[0]
    x_norm = jnp.linalg.norm(x, axis=1, keepdims=True)
    yc = (x @ w_coord) / x_norm + b_coord
    ys = x @ w_sigma + b_sigma
    sigma = jax.nn.sigmoid(ys) + 1e-9
    pred_jts = yc.reshape(N, num_joints, 3)
    sigma = sigma.reshape(N, num_joints, 3)
    maxvals = jnp.mean(1.0 - sigma, axis=2, keepdims=True)
    return pred_jts, sigma, maxvals


if __name__ == "__main__":
    # Small shapes consistent with the head: x is (N, in_channels).
    N = 8
    in_channels = 32
    num_joints = 17
    D = num_joints * 3

    key = jax.random.PRNGKey(0)
    kx, kwc, kbc, kws, kbs = jax.random.split(key, 5)

    x = jax.random.normal(kx, (N, in_channels), dtype=jnp.float32)

    # Deterministic synthetic init mimicking xavier_uniform_(gain=0.01).
    gain = 0.01
    bound_w = gain * (6.0 / (in_channels + D)) ** 0.5
    bound_b = 1.0 / (in_channels ** 0.5)
    w_coord = jax.random.uniform(kwc, (in_channels, D), jnp.float32,
                                 -bound_w, bound_w)
    b_coord = jax.random.uniform(kbc, (1, D), jnp.float32, -bound_b, bound_b)
    w_sigma = jax.random.uniform(kws, (in_channels, D), jnp.float32,
                                 -bound_w, bound_w)
    b_sigma = jax.random.uniform(kbs, (1, D), jnp.float32, -bound_b, bound_b)

    # TODO(synk): RealNVP flows (flow2d/flow3d) and the loss path are not part
    # of forward(); only the forward pass (pred_jts, sigma, maxvals) is kernelized.

    # One-time packing (hoisted out of the forward path).
    w_packed, b_packed = pack_rle_head_params(
        w_coord, b_coord, w_sigma, b_sigma, num_joints)

    out = rle_head_forward_packed(x, w_packed, b_packed, num_joints)
    out = jax.block_until_ready(out)
    pred_jts, sigma, maxvals = out

    ref = ref_forward(x, w_coord, b_coord, w_sigma, b_sigma, num_joints)
    assert pred_jts.shape == (N, num_joints, 3)
    assert sigma.shape == (N, num_joints, 3)
    assert maxvals.shape == (N, num_joints, 1)
    assert jnp.allclose(pred_jts, ref[0], atol=1e-5, rtol=1e-5)
    assert jnp.allclose(sigma, ref[1], atol=1e-5, rtol=1e-5)
    assert jnp.allclose(maxvals, ref[2], atol=1e-5, rtol=1e-5)

    # Also exercise a padded / multi-block path (N not a tile multiple).
    N2 = 37
    x2 = jax.random.normal(jax.random.PRNGKey(1), (N2, in_channels), jnp.float32)
    out2 = jax.block_until_ready(
        rle_head_forward_packed(x2, w_packed, b_packed, num_joints))
    ref2 = ref_forward(x2, w_coord, b_coord, w_sigma, b_sigma, num_joints)
    assert jnp.allclose(out2[0], ref2[0], atol=1e-5, rtol=1e-5)
    assert jnp.allclose(out2[1], ref2[1], atol=1e-5, rtol=1e-5)
    assert jnp.allclose(out2[2], ref2[2], atol=1e-5, rtol=1e-5)

    print("KERNEL_OK")
</pallas_src>

<mosaic_0001>
module attributes {stable_mosaic.version = 11 : i64} {
  func.func @rle_head_kernel(%arg0: i32, %arg1: memref<8x32xf32, #tpu.memory_space<vmem>>, %arg2: memref<32x128xf32, #tpu.memory_space<vmem>>, %arg3: memref<1x128xf32, #tpu.memory_space<vmem>>, %arg4: memref<8x128xf32, #tpu.memory_space<vmem>>) attributes {dimension_semantics = [#tpu.dimension_semantics<parallel>], iteration_bounds = array<i64: 1>, scalar_prefetch = 0 : i64, scratch_operands = 0 : i64, tpu.core_type = #tpu.core_type<tc>, window_params = [{transform_indices = @transform_0, window_bounds = array<i64: 8, 32>}, {pipeline_mode = #tpu.pipeline_mode<synchronous>, transform_indices = @transform_1, window_bounds = array<i64: 32, 128>}, {pipeline_mode = #tpu.pipeline_mode<synchronous>, transform_indices = @transform_2, window_bounds = array<i64: 1, 128>}, {transform_indices = @transform_3, window_bounds = array<i64: 8, 128>}]} {
    %c0 = arith.constant 0 : index
    %c0_0 = arith.constant 0 : index
    %0 = vector.load %arg1[%c0, %c0_0] : memref<8x32xf32, #tpu.memory_space<vmem>>, vector<8x32xf32>
    %c0_1 = arith.constant 0 : index
    %c0_2 = arith.constant 0 : index
    %1 = vector.load %arg2[%c0_1, %c0_2] : memref<32x128xf32, #tpu.memory_space<vmem>>, vector<32x128xf32>
    %cst = arith.constant dense<0.000000e+00> : vector<8x128xf32>
    %2 = tpu.matmul %0, %1, %cst {dimension_numbers = #tpu.dot_dimension_numbers<[1], [0], [0], [1], [0, 0, 1, 1], [], []>} : vector<8x32xf32>, vector<32x128xf32>, vector<8x128xf32> -> vector<8x128xf32>
    %3 = arith.mulf %0, %0 : vector<8x32xf32>
    %cst_3 = arith.constant dense<0.000000e+00> : vector<8xf32>
    %4 = vector.multi_reduction <add>, %3, %cst_3 [1] : vector<8x32xf32> to vector<8xf32>
    %5 = vector.shape_cast %4 : vector<8xf32> to vector<8x1xf32>
    %6 = math.rsqrt %5 : vector<8x1xf32>
    %7 = tpu.iota {dimensions = array<i32: 1>} : vector<1x128xi32>
    %c51_i32 = arith.constant 51 : i32
    %8 = vector.broadcast %c51_i32 : i32 to vector<1x128xi32>
    %9 = arith.cmpi slt, %7, %8 : vector<1x128xi32>
    %c51_i32_4 = arith.constant 51 : i32
    %10 = vector.broadcast %c51_i32_4 : i32 to vector<1x128xi32>
    %11 = arith.cmpi sge, %7, %10 : vector<1x128xi32>
    %c102_i32 = arith.constant 102 : i32
    %12 = vector.broadcast %c102_i32 : i32 to vector<1x128xi32>
    %13 = arith.cmpi slt, %7, %12 : vector<1x128xi32>
    %14 = arith.andi %11, %13 : vector<1x128xi1>
    %cst_5 = arith.constant 1.000000e+00 : f32
    %15 = vector.shape_cast %9 : vector<1x128xi1> to vector<1x128xi1>
    %16 = vector.broadcast %15 : vector<1x128xi1> to vector<8x128xi1>
    %17 = vector.shape_cast %6 : vector<8x1xf32> to vector<8x1xf32>
    %18 = vector.broadcast %17 : vector<8x1xf32> to vector<8x128xf32>
    %19 = vector.broadcast %cst_5 : f32 to vector<8x128xf32>
    %20 = arith.select %16, %18, %19 : vector<8x128xi1>, vector<8x128xf32>
    %21 = arith.mulf %2, %20 : vector<8x128xf32>
    %c0_6 = arith.constant 0 : index
    %c0_7 = arith.constant 0 : index
    %22 = vector.load %arg3[%c0_6, %c0_7] : memref<1x128xf32, #tpu.memory_space<vmem>>, vector<1x128xf32>
    %23 = vector.broadcast %22 : vector<1x128xf32> to vector<8x128xf32>
    %24 = arith.addf %21, %23 : vector<8x128xf32>
    %25 = arith.negf %24 : vector<8x128xf32>
    %26 = math.exp %25 : vector<8x128xf32>
    %cst_8 = arith.constant 1.000000e+00 : f32
    %27 = vector.broadcast %cst_8 : f32 to vector<8x128xf32>
    %28 = arith.addf %27, %26 : vector<8x128xf32>
    %29 = arith.divf %27, %28 : vector<8x128xf32>
    %cst_9 = arith.constant 9.99999971E-10 : f32
    %30 = vector.broadcast %cst_9 : f32 to vector<8x128xf32>
    %31 = arith.addf %29, %30 : vector<8x128xf32>
    %32 = tpu.iota {dimensions = array<i32: 0>} : vector<128x128xi32>
    %33 = tpu.iota {dimensions = array<i32: 1>} : vector<128x128xi32>
    %c51_i32_10 = arith.constant 51 : i32
    %34 = vector.broadcast %c51_i32_10 : i32 to vector<128x128xi32>
    %35 = arith.subi %32, %34 : vector<128x128xi32>
    %c102_i32_11 = arith.constant 102 : i32
    %36 = vector.broadcast %c102_i32_11 : i32 to vector<128x128xi32>
    %37 = arith.subi %33, %36 : vector<128x128xi32>
    %c3_i32 = arith.constant 3 : i32
    %38 = vector.broadcast %c3_i32 : i32 to vector<128x128xi32>
    %39 = arith.muli %38, %37 : vector<128x128xi32>
    %40 = arith.subi %35, %39 : vector<128x128xi32>
    %c51_i32_12 = arith.constant 51 : i32
    %41 = vector.broadcast %c51_i32_12 : i32 to vector<128x128xi32>
    %42 = arith.cmpi sge, %32, %41 : vector<128x128xi32>
    %c102_i32_13 = arith.constant 102 : i32
    %43 = vector.broadcast %c102_i32_13 : i32 to vector<128x128xi32>
    %44 = arith.cmpi slt, %32, %43 : vector<128x128xi32>
    %45 = arith.andi %42, %44 : vector<128x128xi1>
    %c102_i32_14 = arith.constant 102 : i32
    %46 = vector.broadcast %c102_i32_14 : i32 to vector<128x128xi32>
    %47 = arith.cmpi sge, %33, %46 : vector<128x128xi32>
    %48 = arith.andi %45, %47 : vector<128x128xi1>
    %c119_i32 = arith.constant 119 : i32
    %49 = vector.broadcast %c119_i32 : i32 to vector<128x128xi32>
    %50 = arith.cmpi slt, %33, %49 : vector<128x128xi32>
    %51 = arith.andi %48, %50 : vector<128x128xi1>
    %c0_i32 = arith.constant 0 : i32
    %52 = vector.broadcast %c0_i32 : i32 to vector<128x128xi32>
    %53 = arith.cmpi sge, %40, %52 : vector<128x128xi32>
    %54 = arith.andi %51, %53 : vector<128x128xi1>
    %c3_i32_15 = arith.constant 3 : i32
    %55 = vector.broadcast %c3_i32_15 : i32 to vector<128x128xi32>
    %56 = arith.cmpi slt, %40, %55 : vector<128x128xi32>
    %57 = arith.andi %54, %56 : vector<128x128xi1>
    %cst_16 = arith.constant 0.333333343 : f32
    %cst_17 = arith.constant 0.000000e+00 : f32
    %58 = vector.broadcast %cst_16 : f32 to vector<128x128xf32>
    %59 = vector.broadcast %cst_17 : f32 to vector<128x128xf32>
    %60 = arith.select %57, %58, %59 : vector<128x128xi1>, vector<128x128xf32>
    %cst_18 = arith.constant 1.000000e+00 : f32
    %61 = vector.broadcast %cst_18 : f32 to vector<8x128xf32>
    %62 = arith.subf %61, %31 : vector<8x128xf32>
    %cst_19 = arith.constant dense<0.000000e+00> : vector<8x128xf32>
    %63 = tpu.matmul %62, %60, %cst_19 {dimension_numbers = #tpu.dot_dimension_numbers<[1], [0], [0], [1], [0, 0, 1, 1], [], []>} : vector<8x128xf32>, vector<128x128xf32>, vector<8x128xf32> -> vector<8x128xf32>
    %64 = vector.shape_cast %14 : vector<1x128xi1> to vector<1x128xi1>
    %65 = vector.broadcast %64 : vector<1x128xi1> to vector<8x128xi1>
    %66 = arith.select %65, %31, %63 : vector<8x128xi1>, vector<8x128xf32>
    %67 = vector.shape_cast %9 : vector<1x128xi1> to vector<1x128xi1>
    %68 = vector.broadcast %67 : vector<1x128xi1> to vector<8x128xi1>
    %69 = arith.select %68, %24, %66 : vector<8x128xi1>, vector<8x128xf32>
    %c0_20 = arith.constant 0 : index
    %c0_21 = arith.constant 0 : index
    %70 = vector.load %arg4[%c0_20, %c0_21] : memref<8x128xf32, #tpu.memory_space<vmem>>, vector<8x128xf32>
    tpu.vector_store %arg4[%c0_20, %c0_21], %69 {strides = array<i32>} : memref<8x128xf32, #tpu.memory_space<vmem>>, vector<8x128xf32>,
    return
  }
  func.func @transform_0(%arg0: i32) -> (i32, i32) {
    %c0_i32 = arith.constant 0 : i32
    %c0_i32_0 = arith.constant 0 : i32
    return %arg0, %c0_i32 : i32, i32
  }
  func.func @transform_1(%arg0: i32) -> (i32, i32) {
    %c0_i32 = arith.constant 0 : i32
    %c0_i32_0 = arith.constant 0 : i32
    %c0_i32_1 = arith.constant 0 : i32
    return %c0_i32, %c0_i32_0 : i32, i32
  }
  func.func @transform_2(%arg0: i32) -> (i32, i32) {
    %c0_i32 = arith.constant 0 : i32
    %c0_i32_0 = arith.constant 0 : i32
    %c0_i32_1 = arith.constant 0 : i32
    return %c0_i32, %c0_i32_0 : i32, i32
  }
  func.func @transform_3(%arg0: i32) -> (i32, i32) {
    %c0_i32 = arith.constant 0 : i32
    %c0_i32_0 = arith.constant 0 : i32
    return %arg0, %c0_i32 : i32, i32
  }
}

</mosaic_0001>

<bundles_post_ra>
// kernel: rle_head_forward_packed.1
= control target key start
LH: loop header
LB: loop body
LE: loop exit
PB: predicated region body
PF: predicated region fallthrough
CT: control target
= control target key end

     0   :  { %8 = vsyncpa [#allocation3], 0  ;;  %s735_s0 = inlined_call_operand.hbm [shape: f32[8,32], index: 0, kind: input, shape index: {}]   ;;  %s736_s1 = inlined_call_operand.hbm [shape: f32[32,128], index: 1, kind: input, shape index: {}]   ;;  %s737_s2 = inlined_call_operand.vmem [shape: f32[1,128], index: 2, kind: input, shape index: {}]   ;;  %s738_s3 = inlined_call_operand.vmem [shape: f32[8,128], index: 3, kind: output, shape index: {}]  }
   0x1   :  { %9 = vsyncpa [#allocation5], 0  ;;  %s614_s12 = smov [#allocation2]   ;;  %s615_s14 = smov [#allocation4]  }
   0x2   :  { %s16_s13 = sshll.u32 %s614_s12, 4  ;;  %s25_s15 = sshll.u32 %s615_s14, 4  ;;  %s17_s13 = int_to_ptr.vmem [resolvable:$true] %s16_s13  ;;  %s644_s15 = int_to_ptr.vmem [resolvable:$true] %s25_s15 }
   0x3   :  { %s566_s18 = scalar_lea.hbm %s735_s0, 128 }
   0x4   :  { %p567_p0 = scmp.ne.s32.totalorder %s735_s0, %s566_s18  ;;  %p570_p1 = scmp.lt.u32.totalorder %s566_s18, %s735_s0 }
   0x6   :  { %p572_p2 = pnand %p570_p1, %p567_p0 }
   0x8   :  { %575 = shalt.err (!%p572_p2)
}
   0x9   :  { %s576_s23 = scalar_lea.vmem %s17_s13, 128  ;;  %p581_p4 = scmp.lt.s32.totalorder %s17_s13, %s17_s13 }
   0xa   :  { %p577_p3 = scmp.ne.s32.totalorder %s17_s13, %s576_s23  ;;  %p582_p5 = scmp.lt.s32.totalorder %s576_s23, %s576_s23 }
   0xc   :  { %p583_p6 = por %p582_p5, %p581_p4 }
   0xe   :  { %p584_p7 = pnand %p583_p6, %p577_p3 }
  0x10   :  { %587 = shalt.err (!%p584_p7)
}
  0x11   :  { %19 = dma.hbm_to_vmem [thread:$0]  %s735_s0, 128, %s17_s13, [#allocation3]  }
  0x12   :  { %s588_s28 = scalar_lea.hbm %s736_s1, 512 }
  0x13   :  { %p589_p8 = scmp.ne.s32.totalorder %s736_s1, %s588_s28  ;;  %p592_p9 = scmp.lt.u32.totalorder %s588_s28, %s736_s1 }
  0x15   :  { %p594_p10 = pnand %p592_p9, %p589_p8 }
  0x17   :  { %597 = shalt.err (!%p594_p10)
}
  0x18   :  { %s598_s6 = scalar_lea.vmem %s644_s15, 512  ;;  %p603_p12 = scmp.lt.s32.totalorder %s644_s15, %s644_s15 }
  0x19   :  { %p599_p11 = scmp.ne.s32.totalorder %s644_s15, %s598_s6  ;;  %p604_p13 = scmp.lt.s32.totalorder %s598_s6, %s598_s6 }
  0x1b   :  { %p605_p0 = por %p604_p13, %p603_p12 }
  0x1d   :  { %p606_p1 = pnand %p605_p0, %p599_p11 }
  0x1f   :  { %609 = shalt.err (!%p606_p1)
}
  0x20   :  { %s616_s0 = smov 128   ;;  %s617_s7 = smov 8  }
  0x21   :  { %31 = dma.hbm_to_vmem [thread:$0]  %s736_s1, 512, %s644_s15, [#allocation5], %s616_s0, %s616_s0, %s617_s7  }
  0x22   :  { %610 = dma.done.wait [#allocation3], 128  }
  0x23   :  { %611 = vsyncadd [#allocation3], 4294967168 }
  0x24   :  { %612 = dma.done.wait [#allocation5], 512  }
  0x25   :  { %613 = vsyncadd [#allocation5], 4294966784  ;;  %v618_v0 = vmov 0.0|0.0   ;;  %vm619_vm0 = vmmov 0   ;;  %v620_v1 = vmov 0.0   ;;  %v41_v2 = vld [vmem:[#allocation4] sm:$0xff]  ;;  %v124_v11 = vlaneseq }
  0x26   :  { %528 = vmatprep.subr.bf16.mxu0 %v618_v0  ;;  %496 = vmatprep.mubr.msk.f32.mxu0 %vm619_vm0, %v620_v1  ;;  %v42_v3 = vld [vmem:[#allocation4 + $0x8] sm:$0xff]  ;;  %v43_v4 = vld [vmem:[#allocation4 + $0x10] sm:$0xff]  ;;  %v44_v6 = vld [vmem:[#allocation4 + $0x18] sm:$0xff]  ;;  %vm45_vm1 = vcmask 261120   ;;  %v621_v33 = vmov 0.33333334  }
  0x27   :  { %534 = vmatprep.subr.bf16.mxu1 %v618_v0  ;;  %525 = vmatprep.mubr.msk.f32.mxu1 %vm619_vm0, %v620_v1  ;;  %v529_v5 = vpack.c.bf16 %v42_v3, %v41_v2  ;;  %v40_v7 = vld [vmem:[#allocation2] sm:$0xff]  ;;  %v532_v9 = vpack.c.bf16 %v44_v6, %v43_v4  ;;  %v686_v12 = vand.u32 127, %v124_v11  ;;  %v150_v13 = vshrl.u32 %v124_v11, 7 }
  0x28   :  { %535 = vmatpush3.bf16.msra.mxu1 %v618_v0  ;;  %v119_v8 = vmul.f32 %v40_v7, %v40_v7  ;;  %vm622_vm0 = vmmov 1   ;;  %v623_v40 = vmov 0.33398438|0.33398438   ;;  %v445_v47 = vld [vmem:[%s737_s2] ss:$0 sm:$0xff] }
  0x29   :  { %536 = vmatprep.subr.bf16.mxu1 %v618_v0  ;;  %530 = vmatpush3.bf16.msra.mxu0 %v529_v5  ;;  %v156_v14 = vadd.s32 48, %v150_v13  ;;  %v463_v15 = vadd.s32 4294967194, %v686_v12  ;;  %v157_v16 = vadd.s32 56, %v150_v13  ;;  %vm248_vm3 = vcmp.ge.s32.totalorder %v686_v12, 102 }
  0x2a   :  { %531 = vmatprep.subr.bf16.mxu0 %v618_v0  ;;  %v120_v10 = vsel %vm45_vm1, %v119_v8, 0.0  ;;  %vm739_vm5 = vcmp.lt.s32.totalorder %v686_v12, 119  ;;  %v158_v22 = vadd.s32 64, %v150_v13  ;;  %v159_v23 = vadd.s32 72, %v150_v13 }
  0x2b   :  { %121 = vadd.xlane.f32.xlu0 %v120_v10  ;;  %v453_v17 = vadd.s32 4294967245, %v156_v14  ;;  %v183_v18 = vmul.u32 3, %v463_v15  ;;  %v454_v19 = vadd.s32 4294967245, %v157_v16  ;;  %vm206_vm2 = vcmp.ge.s32.totalorder %v156_v14, 51  ;;  %vm699_vm10 = vmand %vm248_vm3, %vm739_vm5 }
  0x2c   :  { %537 = vmatpush3.bf16.msra.mxu1 %v618_v0  ;;  %vm255_vm4 = vmand %vm206_vm2, %vm248_vm3  ;;  %v455_v25 = vadd.s32 4294967245, %v158_v22  ;;  %v456_v26 = vadd.s32 4294967245, %v159_v23  ;;  %v160_v30 = vadd.s32 80, %v150_v13  ;;  %v161_v31 = vadd.s32 88, %v150_v13 }
  0x2d   :  { %538 = vmatprep.subr.bf16.mxu1 %v618_v0  ;;  %533 = vmatpush3.bf16.msra.mxu0 %v532_v9  ;;  %v190_v20 = vsub.s32 %v453_v17, %v183_v18  ;;  %v191_v21 = vsub.s32 %v454_v19, %v183_v18  ;;  %vm272_vm6 = vmand %vm255_vm4, %vm739_vm5  ;;  %v162_v32 = vadd.s32 96, %v150_v13 }
  0x2e   :  { %v192_v27 = vsub.s32 %v455_v25, %v183_v18  ;;  %v193_v28 = vsub.s32 %v456_v26, %v183_v18  ;;  %v457_v35 = vadd.s32 4294967245, %v160_v30  ;;  %v458_v36 = vadd.s32 4294967245, %v161_v31 }
  0x2f   :  { %vm288_vm7 = vcmp.ge.s32.totalorder %v190_v20, 0  ;;  %vm320_vm9 = vcmp.lt.s32.totalorder %v190_v20, 3  ;;  %vm289_vm11 = vcmp.ge.s32.totalorder %v191_v21, 0  ;;  %vm321_vm13 = vcmp.lt.s32.totalorder %v191_v21, 3 }
  0x30   :  { %539 = vmatpush3.bf16.msra.mxu1 %v618_v0  ;;  %497 = vmatmul.mubr.msk.f32.vlgmr.msra.gmra.mrb[0].mxu0 %vm45_vm1, %v40_v7  ;;  %vm304_vm8 = vmand %vm272_vm6, %vm288_vm7  ;;  %vm290_vm2 = vcmp.ge.s32.totalorder %v192_v27, 0  ;;  %vm291_vm4 = vcmp.ge.s32.totalorder %v193_v28, 0  ;;  %vm322_vm6 = vcmp.lt.s32.totalorder %v192_v27, 3  ;;  %v459_v37 = vadd.s32 4294967245, %v162_v32 }
  0x31   :  { %540 = vmatprep.subr.bf16.mxu1 %v618_v0  ;;  %vm305_vm12 = vmand %vm699_vm10, %vm289_vm11  ;;  %vm323_vm11 = vcmp.lt.s32.totalorder %v193_v28, 3  ;;  %v194_v38 = vsub.s32 %v457_v35, %v183_v18  ;;  %v195_v39 = vsub.s32 %v458_v36, %v183_v18 }
  0x32   :  { %vm336_vm14 = vmand %vm304_vm8, %vm320_vm9  ;;  %v196_v41 = vsub.s32 %v459_v37, %v183_v18 }
  0x33   :  { %vm337_vm15 = vmand %vm305_vm12, %vm321_vm13  ;;  %v352_v29 = vsel %vm336_vm14, 0.33333334, %v620_v1  ;;  %vm292_vm14 = vcmp.ge.s32.totalorder %v194_v38, 0 }
  0x34   :  { %v541_v34 = vpack.c.bf16 %v621_v33, %v352_v29  ;;  %vm542_vm1 = vmpackc.low %vm337_vm15, %vm622_vm0  ;;  %vm293_vm15 = vcmp.ge.s32.totalorder %v195_v39, 0  ;;  %vm324_vm0 = vcmp.lt.s32.totalorder %v194_v38, 3 }
  0x35   :  { %vm306_vm7 = vmand %vm699_vm10, %vm290_vm2 }
  0x36   :  { %543 = vmatpush3.bf16.msk.msra.mxu1 %vm542_vm1, %v541_v34  ;;  %vm307_vm8 = vmand %vm699_vm10, %vm291_vm4  ;;  %vm325_vm1 = vcmp.lt.s32.totalorder %v195_v39, 3 }
  0x37   :  { %544 = vmatprep.subr.bf16.mxu1 %v618_v0  ;;  %vm338_vm9 = vmand %vm306_vm7, %vm322_vm6  ;;  %vm228_vm7 = vcmp.lt.s32.totalorder %v162_v32, 102 }
  0x38   :  { %vm339_vm12 = vmand %vm307_vm8, %vm323_vm11  ;;  %vm294_vm8 = vcmp.ge.s32.totalorder %v196_v41, 0 }
  0x39   :  { %vm545_vm13 = vmpackc.low %vm339_vm12, %vm338_vm9  ;;  %vm326_vm12 = vcmp.lt.s32.totalorder %v196_v41, 3 }
  0x3a   :  { %546 = vmatpush3.bf16.msk.msra.mxu1 %vm545_vm13, %v623_v40  ;;  %vm308_vm2 = vmand %vm699_vm10, %vm292_vm14  ;;  %vm742_vm13 = vcmp.lt.s32.totalorder %v686_v12, 119 }
  0x3b   :  { %547 = vmatprep.subr.bf16.mxu1 %v618_v0  ;;  %vm309_vm4 = vmand %vm699_vm10, %vm293_vm15 }
  0x3c   :  { %vm340_vm6 = vmand %vm308_vm2, %vm324_vm0  ;;  %vm128_vm0 = vcmp.lt.s32.totalorder %v686_v12, 102 }
  0x3d   :  { %vm341_vm5 = vmand %vm309_vm4, %vm325_vm1 }
  0x3e   :  { %vm548_vm11 = vmpackc.low %vm341_vm5, %vm340_vm6  ;;  %vm126_vm5 = vcmp.lt.s32.totalorder %v686_v12, 51 }
  0x3f   :  { %549 = vmatpush3.bf16.msk.msra.mxu1 %vm548_vm11, %v623_v40  ;;  %vm261_vm9 = vmand %vm228_vm7, %vm248_vm3  ;;  %vm127_vm3 = vcmp.ge.s32.totalorder %v686_v12, 51 }
  0x40   :  { %523 = vmatprep.subr.mxu1 %v620_v1  ;;  %vm278_vm14 = vmand %vm261_vm9, %vm742_vm13 }
  0x41   :  { %vm310_vm10 = vmand %vm278_vm14, %vm294_vm8 }
  0x42   :  { %vm342_vm15 = vmand %vm310_vm10, %vm326_vm12 }
  0x43   :  { %v358_v42 = vsel %vm342_vm15, 0.33333334, %v620_v1  ;;  %vm129_vm2 = vmand %vm127_vm3, %vm128_vm0 }
  0x44   :  { %524 = vmatpush3.msra.mxu1 %v358_v42 }
  0xb8   :  { %v122_v43 = vpop.xlane.xlu0 %121 }
  0xb9   :  { %560 = vrsqrt.f32 %v122_v43 }
  0xc3   :  { %v561_v44 = vpop.eup %560 }
  0xc4   :  { %v132_v45 = vsel %vm126_vm5, %v561_v44, 1.0 }
 0x103   :  { %v115_v46 = vpop.f32.mrb[0].mxu0 }
 0x104   :  { %v133_v48 = vmul.f32 %v132_v45, %v115_v46  ;;  %v498_v49 = vpop.f32.mrb[1].mxu0 }
 0x106   :  { %v141_v50 = vadd.f32 %v445_v47, %v133_v48 }
 0x108   :  { %v446_v51 = vmul.f32 -1.442695, %v141_v50 }
 0x10a   :  { %562 = vpow2.f32 %v446_v51 }
 0x114   :  { %v563_v52 = vpop.eup %562 }
 0x115   :  { %v145_v53 = vadd.f32 1.0, %v563_v52 }
 0x117   :  { %564 = vrcp.f32 %v145_v53 }
 0x121   :  { %v565_v54 = vpop.eup %564 }
 0x122   :  { %v148_v55 = vadd.f32 1e-09, %v565_v54 }
 0x124   :  { %v362_v56 = vsub.f32 1.0, %v148_v55 }
 0x126   :  { %526 = vmatmul.mubr.f32.vlgmr.msra.gmra.mrb[0].mxu1 %v362_v56 }
 0x1f9   :  { %v429_v57 = vpop.f32.mrb[0].mxu1 }
 0x1fa   :  { %v435_v58 = vsel %vm129_vm2, %v148_v55, %v429_v57  ;;  %v527_v59 = vpop.f32.mrb[1].mxu1 }
 0x1fb   :  { %v436_v60 = vsel %vm126_vm5, %v141_v50, %v435_v58 }
 0x1fc   :  { %437 = vst [vmem:[%s738_s3] sm:$0xff] %v436_v60 }
 0x1fd   :  { %442 = vsyncpa [#allocation3], 1 }
 0x1fe   :  { %443 = vsyncpa [#allocation5], 1 }

</bundles_post_ra>
